<compile_context>
chip_gen: v5e
topology: v5e:2x2
jax: 0.10.0
libtpu: 0.0.40
codegen_flags: <defaults>
</compile_context>

<pallas_src>
import functools

import jax
import jax.numpy as jnp
from jax import lax
from jax.experimental import pallas as pl
from jax.experimental.pallas import tpu as pltpu


def _round_up(x, m):
    return ((x + m - 1) // m) * m


def _bigram_loss_kernel(idx_ref, tgt_ref, emb_ref, logits_ref, loss_ref,
                        *, n_rows, vocab):
    """One row-tile: embedding gather (one-hot @ table) + per-row CE terms."""
    pid = pl.program_id(0)
    idx = idx_ref[...]                                   # (tile_n, 1) int32
    tgt = tgt_ref[...]                                   # (tile_n, 1) int32
    tile_n = idx.shape[0]
    v_pad = emb_ref.shape[1]

    col = lax.broadcasted_iota(jnp.int32, (tile_n, v_pad), 1)
    onehot = (col == idx).astype(jnp.float32)            # (tile_n, v_pad)
    logits = jnp.dot(onehot, emb_ref[...],
                     preferred_element_type=jnp.float32)  # (tile_n, v_pad)
    logits_ref[...] = logits

    # logsumexp over the valid vocab lanes only (padded lanes -> very negative).
    masked = jnp.where(col < vocab, logits, -1e30)
    m = jnp.max(masked, axis=-1, keepdims=True)           # (tile_n, 1)
    lse = jnp.log(jnp.sum(jnp.exp(masked - m), axis=-1, keepdims=True)) + m

    # Target logit via select (no second materialized one-hot).
    tgt_logit = jnp.sum(jnp.where(col == tgt, logits, 0.0),
                        axis=-1, keepdims=True)           # (tile_n, 1)

    # Zero out padded rows (global row index >= n_rows); wrapper sums / N.
    row = pid * tile_n + lax.broadcasted_iota(jnp.int32, (tile_n, 1), 0)
    loss_ref[...] = jnp.where(row < n_rows, lse - tgt_logit, 0.0)


def _bigram_logits_kernel(idx_ref, emb_ref, logits_ref):
    """Inference path: logits only, no cross-entropy arithmetic."""
    idx = idx_ref[...]
    tile_n = idx.shape[0]
    v_pad = emb_ref.shape[1]
    col = lax.broadcasted_iota(jnp.int32, (tile_n, v_pad), 1)
    onehot = (col == idx).astype(jnp.float32)
    logits_ref[...] = jnp.dot(onehot, emb_ref[...],
                              preferred_element_type=jnp.float32)


def bigram_forward(emb_table, idx, targets=None, *, row_tile=256):
    """Pallas implementation of BigramLanguageModel.forward.

    Returns (logits, loss):
      - targets is None: logits shape (B, T, V), loss is None
      - targets given  : logits shape (B*T, V),  loss is scalar f32
    """
    B, T = idx.shape
    V = emb_table.shape[0]
    N = B * T

    # Lane-dense vocab padding and row tiling.
    v_pad = max(128, _round_up(V, 128))
    tile_n = min(row_tile, _round_up(N, 8))
    n_pad = _round_up(N, tile_n)
    num_tiles = n_pad // tile_n

    idx_p = jnp.pad(idx.reshape(N).astype(jnp.int32),
                    (0, n_pad - N)).reshape(n_pad, 1)
    emb_p = jnp.zeros((v_pad, v_pad), jnp.float32)
    emb_p = emb_p.at[:V, :V].set(emb_table.astype(jnp.float32))

    idx_spec = pl.BlockSpec((tile_n, 1), lambda i: (i, 0))
    emb_spec = pl.BlockSpec((v_pad, v_pad), lambda i: (0, 0))   # resident
    logits_spec = pl.BlockSpec((tile_n, v_pad), lambda i: (i, 0))
    loss_spec = pl.BlockSpec((tile_n, 1), lambda i: (i, 0))

    if targets is None:
        logits_p = pl.pallas_call(
            _bigram_logits_kernel,
            out_shape=jax.ShapeDtypeStruct((n_pad, v_pad), jnp.float32),
            grid=(num_tiles,),
            in_specs=[idx_spec, emb_spec],
            out_specs=logits_spec,
            compiler_params=pltpu.CompilerParams(
                dimension_semantics=("parallel",)),
        )(idx_p, emb_p)
        logits = logits_p[:N, :V]
        return logits.reshape(B, T, V), None

    tgt_p = jnp.pad(targets.reshape(N).astype(jnp.int32),
                    (0, n_pad - N)).reshape(n_pad, 1)

    kernel = functools.partial(_bigram_loss_kernel, n_rows=N, vocab=V)
    logits_p, loss_rows = pl.pallas_call(
        kernel,
        out_shape=(
            jax.ShapeDtypeStruct((n_pad, v_pad), jnp.float32),
            jax.ShapeDtypeStruct((n_pad, 1), jnp.float32),
        ),
        grid=(num_tiles,),
        in_specs=[idx_spec, idx_spec, emb_spec],
        out_specs=(logits_spec, loss_spec),
        compiler_params=pltpu.CompilerParams(
            dimension_semantics=("parallel",)),
    )(idx_p, tgt_p, emb_p)

    logits = logits_p[:N, :V]
    loss = jnp.sum(loss_rows) / N     # padded rows were zeroed in-kernel
    return logits, loss


def _reference(emb_table, idx, targets):
    """Pure-JAX reference matching the PyTorch forward."""
    B, T = idx.shape
    V = emb_table.shape[0]
    logits = emb_table[idx].reshape(B * T, V)
    tgt = targets.reshape(B * T)
    lse = jax.nn.logsumexp(logits, axis=-1)
    tgt_logit = jnp.take_along_axis(logits, tgt[:, None], axis=-1)[:, 0]
    loss = jnp.mean(lse - tgt_logit)
    return logits, loss


if __name__ == "__main__":
    key = jax.random.PRNGKey(0)
    k_emb, k_idx, k_tgt = jax.random.split(key, 3)

    vocab_size = 65   # e.g. tiny-shakespeare char vocab
    B, T = 2, 8

    # nn.Embedding(vocab_size, vocab_size) ~ N(0, 1) init.
    emb_table = jax.random.normal(k_emb, (vocab_size, vocab_size), jnp.float32)
    idx = jax.random.randint(k_idx, (B, T), 0, vocab_size, dtype=jnp.int32)
    targets = jax.random.randint(k_tgt, (B, T), 0, vocab_size, dtype=jnp.int32)

    logits, loss = bigram_forward(emb_table, idx, targets)
    jax.block_until_ready((logits, loss))

    ref_logits, ref_loss = _reference(emb_table, idx, targets)
    assert logits.shape == (B * T, vocab_size)
    assert jnp.allclose(logits, ref_logits, atol=1e-5, rtol=1e-5)
    assert jnp.allclose(loss, ref_loss, atol=1e-5, rtol=1e-5)

    # targets=None path: logits-only kernel, matches embedding lookup.
    logits_nt, loss_nt = bigram_forward(emb_table, idx, None)
    jax.block_until_ready(logits_nt)
    assert logits_nt.shape == (B, T, vocab_size) and loss_nt is None
    assert jnp.allclose(logits_nt.reshape(B * T, vocab_size), ref_logits,
                        atol=1e-5, rtol=1e-5)

    print("KERNEL_OK")
</pallas_src>

<mosaic_0001>
module attributes {stable_mosaic.version = 11 : i64} {
  func.func @_bigram_loss_kernel(%arg0: i32, %arg1: memref<16x1xi32, #tpu.memory_space<vmem>>, %arg2: memref<16x1xi32, #tpu.memory_space<vmem>>, %arg3: memref<128x128xf32, #tpu.memory_space<vmem>>, %arg4: memref<16x128xf32, #tpu.memory_space<vmem>>, %arg5: memref<16x1xf32, #tpu.memory_space<vmem>>) attributes {dimension_semantics = [#tpu.dimension_semantics<parallel>], iteration_bounds = array<i64: 1>, scalar_prefetch = 0 : i64, scratch_operands = 0 : i64, tpu.core_type = #tpu.core_type<tc>, window_params = [{transform_indices = @transform_0, window_bounds = array<i64: 16, 1>}, {transform_indices = @transform_1, window_bounds = array<i64: 16, 1>}, {pipeline_mode = #tpu.pipeline_mode<synchronous>, transform_indices = @transform_2, window_bounds = array<i64: 128, 128>}, {transform_indices = @transform_3, window_bounds = array<i64: 16, 128>}, {transform_indices = @transform_4, window_bounds = array<i64: 16, 1>}]} {
    %c0 = arith.constant 0 : index
    %c0_0 = arith.constant 0 : index
    %0 = vector.load %arg1[%c0, %c0_0] : memref<16x1xi32, #tpu.memory_space<vmem>>, vector<16x1xi32>
    %c0_1 = arith.constant 0 : index
    %c0_2 = arith.constant 0 : index
    %1 = vector.load %arg2[%c0_1, %c0_2] : memref<16x1xi32, #tpu.memory_space<vmem>>, vector<16x1xi32>
    %2 = tpu.iota {dimensions = array<i32: 1>} : vector<16x128xi32>
    %3 = vector.broadcast %0 : vector<16x1xi32> to vector<16x128xi32>
    %4 = arith.cmpi eq, %2, %3 : vector<16x128xi32>
    %5 = arith.extui %4 : vector<16x128xi1> to vector<16x128xi32>
    %6 = arith.sitofp %5 : vector<16x128xi32> to vector<16x128xf32>
    %c0_3 = arith.constant 0 : index
    %c0_4 = arith.constant 0 : index
    %7 = vector.load %arg3[%c0_3, %c0_4] : memref<128x128xf32, #tpu.memory_space<vmem>>, vector<128x128xf32>
    %cst = arith.constant dense<0.000000e+00> : vector<16x128xf32>
    %8 = tpu.matmul %6, %7, %cst {dimension_numbers = #tpu.dot_dimension_numbers<[1], [0], [0], [1], [0, 0, 1, 1], [], []>} : vector<16x128xf32>, vector<128x128xf32>, vector<16x128xf32> -> vector<16x128xf32>
    %c0_5 = arith.constant 0 : index
    %c0_6 = arith.constant 0 : index
    %9 = vector.load %arg4[%c0_5, %c0_6] : memref<16x128xf32, #tpu.memory_space<vmem>>, vector<16x128xf32>
    tpu.vector_store %arg4[%c0_5, %c0_6], %8 {strides = array<i32>} : memref<16x128xf32, #tpu.memory_space<vmem>>, vector<16x128xf32>,
    %c65_i32 = arith.constant 65 : i32
    %10 = vector.broadcast %c65_i32 : i32 to vector<16x128xi32>
    %11 = arith.cmpi slt, %2, %10 : vector<16x128xi32>
    %cst_7 = arith.constant -1.000000e+30 : f32
    %12 = vector.broadcast %cst_7 : f32 to vector<16x128xf32>
    %13 = arith.select %11, %8, %12 : vector<16x128xi1>, vector<16x128xf32>
    %cst_8 = arith.constant dense<0xFF800000> : vector<16xf32>
    %14 = vector.multi_reduction <maximumf>, %13, %cst_8 [1] : vector<16x128xf32> to vector<16xf32>
    %15 = vector.shape_cast %14 : vector<16xf32> to vector<16x1xf32>
    %16 = vector.broadcast %15 : vector<16x1xf32> to vector<16x128xf32>
    %17 = arith.subf %13, %16 : vector<16x128xf32>
    %18 = math.exp %17 : vector<16x128xf32>
    %cst_9 = arith.constant dense<0.000000e+00> : vector<16xf32>
    %19 = vector.multi_reduction <add>, %18, %cst_9 [1] : vector<16x128xf32> to vector<16xf32>
    %20 = vector.shape_cast %19 : vector<16xf32> to vector<16x1xf32>
    %21 = math.log %20 : vector<16x1xf32>
    %22 = arith.addf %21, %15 : vector<16x1xf32>
    %23 = vector.broadcast %1 : vector<16x1xi32> to vector<16x128xi32>
    %24 = arith.cmpi eq, %2, %23 : vector<16x128xi32>
    %cst_10 = arith.constant 0.000000e+00 : f32
    %25 = vector.broadcast %cst_10 : f32 to vector<16x128xf32>
    %26 = arith.select %24, %8, %25 : vector<16x128xi1>, vector<16x128xf32>
    %cst_11 = arith.constant dense<0.000000e+00> : vector<16xf32>
    %27 = vector.multi_reduction <add>, %26, %cst_11 [1] : vector<16x128xf32> to vector<16xf32>
    %28 = vector.shape_cast %27 : vector<16xf32> to vector<16x1xf32>
    %c16_i32 = arith.constant 16 : i32
    %29 = arith.muli %arg0, %c16_i32 : i32
    %30 = tpu.iota {dimensions = array<i32: 0>} : vector<16x1xi32>
    %31 = vector.broadcast %29 : i32 to vector<16x1xi32>
    %32 = arith.addi %31, %30 : vector<16x1xi32>
    %c16_i32_12 = arith.constant 16 : i32
    %33 = vector.broadcast %c16_i32_12 : i32 to vector<16x1xi32>
    %34 = arith.cmpi slt, %32, %33 : vector<16x1xi32>
    %35 = arith.subf %22, %28 : vector<16x1xf32>
    %cst_13 = arith.constant 0.000000e+00 : f32
    %36 = vector.broadcast %cst_13 : f32 to vector<16x1xf32>
    %37 = arith.select %34, %35, %36 : vector<16x1xi1>, vector<16x1xf32>
    %c0_14 = arith.constant 0 : index
    %c0_15 = arith.constant 0 : index
    %38 = vector.load %arg5[%c0_14, %c0_15] : memref<16x1xf32, #tpu.memory_space<vmem>>, vector<16x1xf32>
    tpu.vector_store %arg5[%c0_14, %c0_15], %37 {strides = array<i32>} : memref<16x1xf32, #tpu.memory_space<vmem>>, vector<16x1xf32>,
    return
  }
  func.func @transform_0(%arg0: i32) -> (i32, i32) {
    %c0_i32 = arith.constant 0 : i32
    %c0_i32_0 = arith.constant 0 : i32
    return %arg0, %c0_i32 : i32, i32
  }
  func.func @transform_1(%arg0: i32) -> (i32, i32) {
    %c0_i32 = arith.constant 0 : i32
    %c0_i32_0 = arith.constant 0 : i32
    return %arg0, %c0_i32 : i32, i32
  }
  func.func @transform_2(%arg0: i32) -> (i32, i32) {
    %c0_i32 = arith.constant 0 : i32
    %c0_i32_0 = arith.constant 0 : i32
    %c0_i32_1 = arith.constant 0 : i32
    return %c0_i32, %c0_i32_0 : i32, i32
  }
  func.func @transform_3(%arg0: i32) -> (i32, i32) {
    %c0_i32 = arith.constant 0 : i32
    %c0_i32_0 = arith.constant 0 : i32
    return %arg0, %c0_i32 : i32, i32
  }
  func.func @transform_4(%arg0: i32) -> (i32, i32) {
    %c0_i32 = arith.constant 0 : i32
    %c0_i32_0 = arith.constant 0 : i32
    return %arg0, %c0_i32 : i32, i32
  }
}

</mosaic_0001>

<bundles_post_ra>
// kernel: tpu_custom_call.1
= control target key start
LH: loop header
LB: loop body
LE: loop exit
PB: predicated region body
PF: predicated region fallthrough
CT: control target
= control target key end

     0   :  { %10 = vsyncpa [#allocation3], 0  ;;  %s317_s0 = inlined_call_operand.vmem [shape: s32[16,1], index: 0, kind: input, shape index: {}]   ;;  %s318_s1 = inlined_call_operand.vmem [shape: s32[16,1], index: 1, kind: input, shape index: {}]   ;;  %s319_s2 = inlined_call_operand.hbm [shape: f32[128,128], index: 2, kind: input, shape index: {}]   ;;  %s320_s3 = inlined_call_operand.hbm [shape: f32[16,128], index: 3, kind: output, shape index: {0}]   ;;  %s321_s4 = inlined_call_operand.vmem [shape: f32[16,1], index: 4, kind: output, shape index: {1}]  }
   0x1   :  { %11 = vsyncpa [#allocation4], 0  ;;  %s20_s17 = sshll.u32 %s319_s2, 4  ;;  %s256_s18 = smov [#allocation2]   ;;  %s21_s17 = int_to_ptr.hbm [resolvable:$true] %s20_s17 }
   0x2   :  { %s22_s19 = sshll.u32 %s256_s18, 4  ;;  %s257_s20 = smov 128   ;;  %s23_s19 = int_to_ptr.vmem [resolvable:$true] %s22_s19 }
   0x3   :  { %s258_s21 = smov 8  }
   0x4   :  { %28 = dma.hbm_to_vmem [thread:$0]  %s21_s17, 2048, %s23_s19, [#allocation3], %s257_s20, %s257_s20, %s258_s21  }
   0x5   :  { %252 = dma.done.wait [#allocation3], 2048  }
   0x6   :  { %253 = vsyncadd [#allocation3], 4294965248  ;;  %v259_v0 = vmov 0   ;;  %v33_v1 = vld [vmem:[%s317_s0] sm:$0xff]  ;;  %v66_v2 = vld [vmem:[#allocation2 + $0x78] sm:$0xff]  ;;  %v37_v21 = vlaneseq  ;;  %v260_v24 = vmov 1.0  }
   0x7   :  { %194 = vset.pattern.permute.xlu0 %v259_v0  ;;  %195 = vset.pattern.permute.xlu2 %v259_v0  ;;  %v65_v3 = vld [vmem:[#allocation2 + $0x70] sm:$0xff]  ;;  %v64_v4 = vld [vmem:[#allocation2 + $0x68] sm:$0xff]  ;;  %v63_v5 = vld [vmem:[#allocation2 + $0x60] sm:$0xff]  ;;  %s151_s5 = sshll.u32 %s320_s3, 4  ;;  %vm142_vm5 = vcmask 7168   ;;  %s152_s5 = int_to_ptr.hbm [resolvable:$true] %s151_s5 }
   0x8   :  { %40 = vperm.xlu0 %194, %v33_v1   ;;  %67 = vmatpush.msra.mxu0 %v66_v2  ;;  %v34_v6 = vld [vmem:[%s317_s0 + $0x8] sm:$0xff]  ;;  %v62_v7 = vld [vmem:[#allocation2 + $0x58] sm:$0xff]  ;;  %v61_v8 = vld [vmem:[#allocation2 + $0x50] sm:$0xff]  ;;  %v38_v22 = vand.u32 127, %v37_v21 }
   0x9   :  { %172 = vmatpush.msra.mxu1 %v66_v2  ;;  %v60_v9 = vld [vmem:[#allocation2 + $0x48] sm:$0xff]  ;;  %v59_v10 = vld [vmem:[#allocation2 + $0x40] sm:$0xff]  ;;  %v58_v11 = vld [vmem:[#allocation2 + $0x38] sm:$0xff] }
   0xa   :  { %68 = vmatpush.msra.mxu0 %v65_v3  ;;  %v57_v12 = vld [vmem:[#allocation2 + $0x30] sm:$0xff]  ;;  %v56_v13 = vld [vmem:[#allocation2 + $0x28] sm:$0xff]  ;;  %v55_v14 = vld [vmem:[#allocation2 + $0x20] sm:$0xff]  ;;  %vm92_vm3 = vcmp.lt.s32.totalorder %v38_v22, 65 }
   0xb   :  { %173 = vmatpush.msra.mxu1 %v65_v3  ;;  %v54_v15 = vld [vmem:[#allocation2 + $0x18] sm:$0xff]  ;;  %v53_v16 = vld [vmem:[#allocation2 + $0x10] sm:$0xff]  ;;  %v52_v17 = vld [vmem:[#allocation2 + $0x8] sm:$0xff] }
   0xc   :  { %69 = vmatpush.msra.mxu0 %v64_v4  ;;  %v51_v18 = vld [vmem:[#allocation2] sm:$0xff]  ;;  %v36_v20 = vld [vmem:[%s318_s1 + $0x8] sm:$0xff] }
   0xd   :  { %174 = vmatpush.msra.mxu1 %v64_v4  ;;  %v35_v19 = vld [vmem:[%s318_s1] sm:$0xff]  ;;  %s261_s1 = smov [#allocation5]  }
   0xe   :  { %70 = vmatpush.msra.mxu0 %v63_v5  ;;  %116 = vperm.xlu2 %195, %v35_v19   ;;  %s149_s28 = sshll.u32 %s261_s1, 4  ;;  %s150_s28 = int_to_ptr.vmem [resolvable:$true] %s149_s28 }
   0xf   :  { %175 = vmatpush.msra.mxu1 %v63_v5 }
  0x10   :  { %43 = vperm.xlu0 %194, %v34_v6   ;;  %71 = vmatpush.msra.mxu0 %v62_v7 }
  0x11   :  { %176 = vmatpush.msra.mxu1 %v62_v7 }
  0x12   :  { %72 = vmatpush.msra.mxu0 %v61_v8 }
  0x13   :  { %177 = vmatpush.msra.mxu1 %v61_v8 }
  0x14   :  { %73 = vmatpush.msra.mxu0 %v60_v9 }
  0x15   :  { %178 = vmatpush.msra.mxu1 %v60_v9 }
  0x16   :  { %74 = vmatpush.msra.mxu0 %v59_v10  ;;  %119 = vperm.xlu2 %195, %v36_v20  }
  0x17   :  { %179 = vmatpush.msra.mxu1 %v59_v10 }
  0x18   :  { %75 = vmatpush.msra.mxu0 %v58_v11 }
  0x19   :  { %180 = vmatpush.msra.mxu1 %v58_v11 }
  0x1a   :  { %76 = vmatpush.msra.mxu0 %v57_v12 }
  0x1b   :  { %181 = vmatpush.msra.mxu1 %v57_v12 }
  0x1c   :  { %77 = vmatpush.msra.mxu0 %v56_v13 }
  0x1d   :  { %182 = vmatpush.msra.mxu1 %v56_v13 }
  0x1e   :  { %78 = vmatpush.msra.mxu0 %v55_v14 }
  0x1f   :  { %183 = vmatpush.msra.mxu1 %v55_v14 }
  0x20   :  { %79 = vmatpush.msra.mxu0 %v54_v15 }
  0x21   :  { %184 = vmatpush.msra.mxu1 %v54_v15 }
  0x22   :  { %80 = vmatpush.msra.mxu0 %v53_v16 }
  0x23   :  { %185 = vmatpush.msra.mxu1 %v53_v16 }
  0x24   :  { %81 = vmatpush.msra.mxu0 %v52_v17 }
  0x25   :  { %186 = vmatpush.msra.mxu1 %v52_v17 }
  0x26   :  { %82 = vmatpush.msra.mxu0 %v51_v18 }
  0x27   :  { %187 = vmatpush.msra.mxu1 %v51_v18 }
  0x68   :  { %v117_v26 = vpop.permute.xlu2 %116 }
  0x69   :  { %vm121_vm2 = vcmp.eq.s32.totalorder %v38_v22, %v117_v26 }
  0x70   :  { %v120_v40 = vpop.permute.xlu2 %119 }
  0x71   :  { %vm122_vm4 = vcmp.eq.s32.totalorder %v38_v22, %v120_v40 }
  0x7a   :  { %v41_v23 = vpop.permute.xlu0 %40 }
  0x7b   :  { %vm45_vm0 = vcmp.eq.s32.totalorder %v38_v22, %v41_v23 }
  0x7c   :  { %170 = vmatmul.msk.f32.vlgmr.msra.gmra.mxu0 %vm45_vm0, %v260_v24 }
  0x82   :  { %v44_v25 = vpop.permute.xlu0 %43 }
  0x83   :  { %vm46_vm1 = vcmp.eq.s32.totalorder %v38_v22, %v44_v25 }
  0x84   :  { %171 = vmatmul.msk.f32.vlgmr.msra.gmra.mxu1 %vm46_vm1, %v260_v24 }
  0xf9   :  { %v84_v27 = vpop.f32.mrf.mxu0 }
  0xfa   :  { %90 = vst [vmem:[#allocation5] sm:$0xff] %v84_v27  ;;  %v123_v28 = vsel %vm121_vm2, %v84_v27, 0.0  ;;  %v93_v29 = vsel %vm92_vm3, %v84_v27, -1e+30 }
  0xfb   :  { %125 = vadd.xlane.f32.xlu2 %v123_v28  ;;  %95 = vmax.xlane.f32.xlu1 %v93_v29 }
 0x101   :  { %v87_v30 = vpop.f32.mrf.mxu1 }
 0x102   :  { %91 = vst [vmem:[#allocation5 + $0x8] sm:$0xff] %v87_v30  ;;  %v94_v31 = vsel %vm92_vm3, %v87_v30, -1e+30  ;;  %v124_v41 = vsel %vm122_vm4, %v87_v30, 0.0 }
 0x103   :  { %97 = vmax.xlane.f32.xlu1 %v94_v31  ;;  %157 = dma.vmem_to_hbm [thread:$0]  %s150_s28, 256, %s152_s5, [#allocation4], %s257_s20, %s257_s20, %s258_s21  }
 0x16e   :  { %v96_v32 = vpop.xlane.xlu1 %95  ;;  %v126_v47 = vpop.xlane.xlu2 %125 }
 0x16f   :  { %v99_v33 = vsub.f32 %v93_v29, %v96_v32 }
 0x171   :  { %v101_v34 = vmul.f32 1.442695, %v99_v33 }
 0x173   :  { %196 = vpow2.f32 %v101_v34 }
 0x176   :  { %v98_v35 = vpop.xlane.xlu1 %97 }
 0x177   :  { %v100_v36 = vsub.f32 %v94_v31, %v98_v35 }
 0x179   :  { %v197_v37 = vpop.eup %196  ;;  %v103_v38 = vmul.f32 1.442695, %v100_v36 }
 0x17a   :  { %105 = vadd.xlane.f32.xlu0 %v197_v37 }
 0x17b   :  { %198 = vpow2.f32 %v103_v38 }
 0x181   :  { %v199_v39 = vpop.eup %198 }
 0x182   :  { %107 = vadd.xlane.f32.xlu1 %v199_v39 }
 0x18a   :  { %127 = vadd.xlane.f32.xlu1 %v124_v41 }
 0x1ed   :  { %v106_v42 = vpop.xlane.xlu0 %105 }
 0x1ee   :  { %200 = vlog2.f32 %v106_v42 }
 0x1f4   :  { %v201_v43 = vpop.eup %200 }
 0x1f5   :  { %v110_v44 = vmul.f32 0.6931472, %v201_v43  ;;  %v108_v45 = vpop.xlane.xlu1 %107 }
 0x1f6   :  { %202 = vlog2.f32 %v108_v45 }
 0x1f7   :  { %v113_v46 = vadd.f32 %v110_v44, %v96_v32 }
 0x1f9   :  { %v138_v48 = vsub.f32 %v113_v46, %v126_v47 }
 0x1fb   :  { %143 = vst.msk [vmem:[%s321_s4] sm:$0xff] %vm142_vm5, %v138_v48 }
 0x1fc   :  { %v203_v49 = vpop.eup %202 }
 0x1fd   :  { %v112_v50 = vmul.f32 0.6931472, %v203_v49  ;;  %v128_v52 = vpop.xlane.xlu1 %127 }
 0x1ff   :  { %v114_v51 = vadd.f32 %v112_v50, %v98_v35 }
 0x201   :  { %v139_v53 = vsub.f32 %v114_v51, %v128_v52 }
 0x203   :  { %144 = vst.msk [vmem:[%s321_s4 + $0x8] sm:$0xff] %vm142_vm5, %v139_v53 }
 0x204   :  { %254 = dma.done.wait [#allocation4], 256  }
 0x205   :  { %255 = vsyncadd [#allocation4], 4294967040 }
 0x206   :  { %166 = vsyncpa [#allocation3], 1 }
 0x207   :  { %167 = vsyncpa [#allocation4], 1 }

</bundles_post_ra>
